<compile_context>
chip_gen: v5e
topology: v5e:2x2
jax: 0.10.0
libtpu: 0.0.40
codegen_flags: <defaults>
</compile_context>

<pallas_src>
import functools

import jax
import jax.numpy as jnp
from jax.experimental import pallas as pl
from jax.experimental.pallas import tpu as pltpu

D_MODEL = 128          # config.d_model
INPUT_DIM = 1024       # PhysicsEncoder input_dim (C*H*W = 4*16*16)
OUTPUT_DIM = 3         # PhysicsDecoder output_dim
PREDICT_STEPS = 3      # predict_steps for this example
LANE = 128             # TPU lane width
SUBLANE = 8            # f32 min sublane tile


def _round_up(n, m):
    return ((n + m - 1) // m) * m


def _silu(x):
    return x * jax.nn.sigmoid(x)


def physics_engine_kernel(x_ref, we_ref, be_ref, wp_ref, bp_ref, wd_ref, bd_ref,
                          out_ref, *, predict_steps, d_model):
    """One batch (M) tile of the fused encoder / predictor-rollout / decoder.

    x_ref:   [tm, 1024] bf16  flattened observation tile
    we_ref:  [1024, D]  bf16  encoder weight (pre-transposed),  be_ref: [1, D]   f32
    wp_ref:  [D, D]     bf16  predictor weight,                 bp_ref: [1, D]   f32
    wd_ref:  [D, 128]   bf16  decoder weight (zero-padded past col 3), bd_ref: [1, 128] f32
    out_ref: [tm, (2 + predict_steps) * 128] f32 lane-dense slab:
             [ latent | pred step 0 .. pred step S-1 | decoded obs (lane-padded) ]
    """
    x = x_ref[...]                                                    # bf16 [tm, 1024]

    # --- encoder: Linear(1024 -> D) + SiLU (MXU matmul, f32 accumulate) ---
    h = _silu(jnp.dot(x, we_ref[...], preferred_element_type=jnp.float32) + be_ref[...])
    out_ref[:, 0:d_model] = h                                         # f32 [tm, D]

    # --- PhysicsPredictor rollout: predict_steps x (Linear(D -> D) + SiLU) ---
    cur = h
    for s in range(predict_steps):
        cur = _silu(jnp.dot(cur.astype(jnp.bfloat16), wp_ref[...],
                            preferred_element_type=jnp.float32) + bp_ref[...])
        # static, 128-lane-aligned column slice -> unmasked vst
        out_ref[:, (1 + s) * d_model:(2 + s) * d_model] = cur

    # --- decoder: Linear(D -> 3), lane-padded to 128 output columns ---
    obs_col = (1 + predict_steps) * d_model
    out_ref[:, obs_col:obs_col + LANE] = (
        jnp.dot(cur.astype(jnp.bfloat16), wd_ref[...],
                preferred_element_type=jnp.float32) + bd_ref[...])


def prepare_engine_params(params):
    """One-time preprocessing (call once, reuse every step):
    bf16 weight casts + decoder zero-pad to 128 output lanes."""
    wd = jnp.zeros((D_MODEL, LANE), jnp.bfloat16).at[:, :OUTPUT_DIM].set(
        params["w_dec"].astype(jnp.bfloat16))
    bd = jnp.zeros((1, LANE), jnp.float32).at[:, :OUTPUT_DIM].set(
        params["b_dec"].astype(jnp.float32))
    return {
        "w_enc": params["w_enc"].astype(jnp.bfloat16),
        "b_enc": params["b_enc"].astype(jnp.float32),
        "w_pred": params["w_pred"].astype(jnp.bfloat16),
        "b_pred": params["b_pred"].astype(jnp.float32),
        "w_dec_padded": wd,
        "b_dec_padded": bd,
    }


def physics_engine_forward(current_obs, prepped, predict_steps=PREDICT_STEPS, tile_m=256):
    """Mirrors PhysicsEngine.forward. `prepped` must come from prepare_engine_params().

    tile_m: batch (M) tile per grid step. 256 fills a v6e/v7x MXU; use 128 on v5e.
    """
    b = current_obs.shape[0]
    # single bf16 materialization: flatten (view) -> bf16 cast -> pad ragged sublane rows
    x = current_obs.reshape(b, -1).astype(jnp.bfloat16)
    assert x.shape[1] == INPUT_DIM

    tm = min(tile_m, _round_up(b, SUBLANE))
    b_pad = _round_up(b, tm)
    x_pad = jnp.pad(x, ((0, b_pad - b), (0, 0)))

    n_cols = (2 + predict_steps) * D_MODEL
    grid = (b_pad // tm,)

    # constant block index -> weights DMA'd once and stay resident in VMEM across the grid
    def weight_spec(shape):
        return pl.BlockSpec(shape, lambda i: (0, 0))

    kernel = functools.partial(physics_engine_kernel,
                               predict_steps=predict_steps, d_model=D_MODEL)

    in_arrays = (x_pad, prepped["w_enc"], prepped["b_enc"], prepped["w_pred"],
                 prepped["b_pred"], prepped["w_dec_padded"], prepped["b_dec_padded"])
    flops = 2 * b_pad * (INPUT_DIM * D_MODEL
                         + predict_steps * D_MODEL * D_MODEL
                         + D_MODEL * LANE)
    transcendentals = b_pad * D_MODEL * (1 + predict_steps)           # one sigmoid per SiLU
    bytes_accessed = (sum(a.size * a.dtype.itemsize for a in in_arrays)
                      + 4 * b_pad * n_cols)

    out_slab = pl.pallas_call(
        kernel,
        out_shape=jax.ShapeDtypeStruct((b_pad, n_cols), jnp.float32),
        grid_spec=pltpu.PrefetchScalarGridSpec(
            num_scalar_prefetch=0,
            grid=grid,
            in_specs=[
                pl.BlockSpec((tm, INPUT_DIM), lambda i: (i, 0)),      # x tiled over batch
                weight_spec((INPUT_DIM, D_MODEL)),                    # w_enc  (resident)
                weight_spec((1, D_MODEL)),                            # b_enc
                weight_spec((D_MODEL, D_MODEL)),                      # w_pred
                weight_spec((1, D_MODEL)),                            # b_pred
                weight_spec((D_MODEL, LANE)),                         # w_dec (lane-padded)
                weight_spec((1, LANE)),                               # b_dec (lane-padded)
            ],
            out_specs=pl.BlockSpec((tm, n_cols), lambda i: (i, 0)),
        ),
        compiler_params=pltpu.CompilerParams(
            dimension_semantics=("parallel",)),                       # megacore-shard the batch axis
        cost_estimate=pl.CostEstimate(flops=flops,
                                      transcendentals=transcendentals,
                                      bytes_accessed=bytes_accessed),
    )(*in_arrays)

    # split the lane-dense slab back into the engine's outputs (padded rows/lanes sliced off)
    latent = out_slab[:b, :D_MODEL]
    pred_latents = (out_slab[:b, D_MODEL:(1 + predict_steps) * D_MODEL]
                    .reshape(b, predict_steps, D_MODEL).transpose(1, 0, 2))
    obs_col = (1 + predict_steps) * D_MODEL
    pred_obs = out_slab[:b, obs_col:obs_col + OUTPUT_DIM]

    return {
        "input_observation": current_obs,
        "initial_latent_state": latent,
        "predicted_latent_states": pred_latents,
        "predicted_observation": pred_obs,
    }


def _reference_forward(current_obs, params, predict_steps=PREDICT_STEPS):
    """Pure-JAX reference matching the kernel's bf16-weight / f32-accumulate numerics."""
    x = current_obs.reshape(current_obs.shape[0], -1).astype(jnp.bfloat16)
    we = params["w_enc"].astype(jnp.bfloat16)
    wp = params["w_pred"].astype(jnp.bfloat16)
    wd = params["w_dec"].astype(jnp.bfloat16)
    h = _silu(jnp.dot(x, we, preferred_element_type=jnp.float32) + params["b_enc"])
    preds = []
    cur = h
    for _ in range(predict_steps):
        cur = _silu(jnp.dot(cur.astype(jnp.bfloat16), wp,
                            preferred_element_type=jnp.float32) + params["b_pred"])
        preds.append(cur)
    obs = jnp.dot(cur.astype(jnp.bfloat16), wd,
                  preferred_element_type=jnp.float32) + params["b_dec"]
    return h, jnp.stack(preds), obs


def _init_params(key):
    k = jax.random.split(key, 6)
    scale_e = 1.0 / jnp.sqrt(INPUT_DIM)
    scale_p = 1.0 / jnp.sqrt(D_MODEL)
    return {
        "w_enc": jax.random.uniform(k[0], (INPUT_DIM, D_MODEL), jnp.float32, -scale_e, scale_e),
        "b_enc": jax.random.uniform(k[1], (1, D_MODEL), jnp.float32, -scale_e, scale_e),
        "w_pred": jax.random.uniform(k[2], (D_MODEL, D_MODEL), jnp.float32, -scale_p, scale_p),
        "b_pred": jax.random.uniform(k[3], (1, D_MODEL), jnp.float32, -scale_p, scale_p),
        "w_dec": jax.random.uniform(k[4], (D_MODEL, OUTPUT_DIM), jnp.float32, -scale_p, scale_p),
        "b_dec": jax.random.uniform(k[5], (1, OUTPUT_DIM), jnp.float32, -scale_p, scale_p),
    }


if __name__ == "__main__":
    key = jax.random.PRNGKey(0)
    k_obs, k_params = jax.random.split(key)

    # [B, C, H, W] = [2, 4, 16, 16] -> flattened feature dim 4*16*16 = 1024
    current_obs = jax.random.normal(k_obs, (2, 4, 16, 16), dtype=jnp.float32)
    params = _init_params(k_params)

    # one-time weight prep (hoisted out of the per-step forward), then a jitted forward
    prepped = jax.tree_util.tree_map(jax.device_put, prepare_engine_params(params))
    forward = jax.jit(functools.partial(physics_engine_forward,
                                        predict_steps=PREDICT_STEPS, tile_m=256))

    out = forward(current_obs, prepped)
    jax.block_until_ready(out)

    # correctness check vs. numerics-matched pure-JAX reference
    ref_latent, ref_preds, ref_obs = _reference_forward(current_obs, params, PREDICT_STEPS)
    assert jnp.allclose(out["initial_latent_state"], ref_latent, atol=1e-3, rtol=1e-3)
    assert jnp.allclose(out["predicted_latent_states"], ref_preds, atol=1e-3, rtol=1e-3)
    assert jnp.allclose(out["predicted_observation"], ref_obs, atol=1e-3, rtol=1e-3)

    print("KERNEL_OK")
</pallas_src>

<mosaic_0001>
module attributes {stable_mosaic.version = 11 : i64} {
  func.func @physics_engine_kernel(%arg0: i32, %arg1: memref<8x1024xbf16, #tpu.memory_space<vmem>>, %arg2: memref<1024x128xbf16, #tpu.memory_space<vmem>>, %arg3: memref<1x128xf32, #tpu.memory_space<vmem>>, %arg4: memref<128x128xbf16, #tpu.memory_space<vmem>>, %arg5: memref<1x128xf32, #tpu.memory_space<vmem>>, %arg6: memref<128x128xbf16, #tpu.memory_space<vmem>>, %arg7: memref<1x128xf32, #tpu.memory_space<vmem>>, %arg8: memref<8x640xf32, #tpu.memory_space<vmem>>) attributes {dimension_semantics = [#tpu.dimension_semantics<parallel>], iteration_bounds = array<i64: 1>, scalar_prefetch = 0 : i64, scratch_operands = 0 : i64, tpu.core_type = #tpu.core_type<tc>, window_params = [{transform_indices = @transform_0, window_bounds = array<i64: 8, 1024>}, {pipeline_mode = #tpu.pipeline_mode<synchronous>, transform_indices = @transform_1, window_bounds = array<i64: 1024, 128>}, {pipeline_mode = #tpu.pipeline_mode<synchronous>, transform_indices = @transform_2, window_bounds = array<i64: 1, 128>}, {pipeline_mode = #tpu.pipeline_mode<synchronous>, transform_indices = @transform_3, window_bounds = array<i64: 128, 128>}, {pipeline_mode = #tpu.pipeline_mode<synchronous>, transform_indices = @transform_4, window_bounds = array<i64: 1, 128>}, {pipeline_mode = #tpu.pipeline_mode<synchronous>, transform_indices = @transform_5, window_bounds = array<i64: 128, 128>}, {pipeline_mode = #tpu.pipeline_mode<synchronous>, transform_indices = @transform_6, window_bounds = array<i64: 1, 128>}, {transform_indices = @transform_7, window_bounds = array<i64: 8, 640>}]} {
    %c0 = arith.constant 0 : index
    %c0_0 = arith.constant 0 : index
    %0 = vector.load %arg1[%c0, %c0_0] : memref<8x1024xbf16, #tpu.memory_space<vmem>>, vector<8x1024xbf16>
    %c0_1 = arith.constant 0 : index
    %c0_2 = arith.constant 0 : index
    %1 = vector.load %arg2[%c0_1, %c0_2] : memref<1024x128xbf16, #tpu.memory_space<vmem>>, vector<1024x128xbf16>
    %cst = arith.constant dense<0.000000e+00> : vector<8x128xf32>
    %2 = tpu.matmul %0, %1, %cst {dimension_numbers = #tpu.dot_dimension_numbers<[1], [0], [0], [1], [0, 0, 1, 1], [], []>} : vector<8x1024xbf16>, vector<1024x128xbf16>, vector<8x128xf32> -> vector<8x128xf32>
    %c0_3 = arith.constant 0 : index
    %c0_4 = arith.constant 0 : index
    %3 = vector.load %arg3[%c0_3, %c0_4] : memref<1x128xf32, #tpu.memory_space<vmem>>, vector<1x128xf32>
    %4 = vector.broadcast %3 : vector<1x128xf32> to vector<8x128xf32>
    %5 = arith.addf %2, %4 : vector<8x128xf32>
    %6 = arith.negf %5 : vector<8x128xf32>
    %7 = math.exp %6 : vector<8x128xf32>
    %cst_5 = arith.constant 1.000000e+00 : f32
    %8 = vector.broadcast %cst_5 : f32 to vector<8x128xf32>
    %9 = arith.addf %8, %7 : vector<8x128xf32>
    %10 = arith.divf %8, %9 : vector<8x128xf32>
    %11 = arith.mulf %5, %10 : vector<8x128xf32>
    %c0_6 = arith.constant 0 : index
    %c0_7 = arith.constant 0 : index
    %12 = vector.load %arg8[%c0_6, %c0_7] : memref<8x640xf32, #tpu.memory_space<vmem>>, vector<8x128xf32>
    tpu.vector_store %arg8[%c0_6, %c0_7], %11 {strides = array<i32>} : memref<8x640xf32, #tpu.memory_space<vmem>>, vector<8x128xf32>,
    %13 = arith.truncf %11 : vector<8x128xf32> to vector<8x128xbf16>
    %c0_8 = arith.constant 0 : index
    %c0_9 = arith.constant 0 : index
    %14 = vector.load %arg4[%c0_8, %c0_9] : memref<128x128xbf16, #tpu.memory_space<vmem>>, vector<128x128xbf16>
    %cst_10 = arith.constant dense<0.000000e+00> : vector<8x128xf32>
    %15 = tpu.matmul %13, %14, %cst_10 {dimension_numbers = #tpu.dot_dimension_numbers<[1], [0], [0], [1], [0, 0, 1, 1], [], []>} : vector<8x128xbf16>, vector<128x128xbf16>, vector<8x128xf32> -> vector<8x128xf32>
    %c0_11 = arith.constant 0 : index
    %c0_12 = arith.constant 0 : index
    %16 = vector.load %arg5[%c0_11, %c0_12] : memref<1x128xf32, #tpu.memory_space<vmem>>, vector<1x128xf32>
    %17 = vector.broadcast %16 : vector<1x128xf32> to vector<8x128xf32>
    %18 = arith.addf %15, %17 : vector<8x128xf32>
    %19 = arith.negf %18 : vector<8x128xf32>
    %20 = math.exp %19 : vector<8x128xf32>
    %cst_13 = arith.constant 1.000000e+00 : f32
    %21 = vector.broadcast %cst_13 : f32 to vector<8x128xf32>
    %22 = arith.addf %21, %20 : vector<8x128xf32>
    %23 = arith.divf %21, %22 : vector<8x128xf32>
    %24 = arith.mulf %18, %23 : vector<8x128xf32>
    %c0_14 = arith.constant 0 : index
    %c128 = arith.constant 128 : index
    %25 = vector.load %arg8[%c0_14, %c128] : memref<8x640xf32, #tpu.memory_space<vmem>>, vector<8x128xf32>
    tpu.vector_store %arg8[%c0_14, %c128], %24 {strides = array<i32>} : memref<8x640xf32, #tpu.memory_space<vmem>>, vector<8x128xf32>,
    %26 = arith.truncf %24 : vector<8x128xf32> to vector<8x128xbf16>
    %c0_15 = arith.constant 0 : index
    %c0_16 = arith.constant 0 : index
    %27 = vector.load %arg4[%c0_15, %c0_16] : memref<128x128xbf16, #tpu.memory_space<vmem>>, vector<128x128xbf16>
    %cst_17 = arith.constant dense<0.000000e+00> : vector<8x128xf32>
    %28 = tpu.matmul %26, %27, %cst_17 {dimension_numbers = #tpu.dot_dimension_numbers<[1], [0], [0], [1], [0, 0, 1, 1], [], []>} : vector<8x128xbf16>, vector<128x128xbf16>, vector<8x128xf32> -> vector<8x128xf32>
    %c0_18 = arith.constant 0 : index
    %c0_19 = arith.constant 0 : index
    %29 = vector.load %arg5[%c0_18, %c0_19] : memref<1x128xf32, #tpu.memory_space<vmem>>, vector<1x128xf32>
    %30 = vector.broadcast %29 : vector<1x128xf32> to vector<8x128xf32>
    %31 = arith.addf %28, %30 : vector<8x128xf32>
    %32 = arith.negf %31 : vector<8x128xf32>
    %33 = math.exp %32 : vector<8x128xf32>
    %cst_20 = arith.constant 1.000000e+00 : f32
    %34 = vector.broadcast %cst_20 : f32 to vector<8x128xf32>
    %35 = arith.addf %34, %33 : vector<8x128xf32>
    %36 = arith.divf %34, %35 : vector<8x128xf32>
    %37 = arith.mulf %31, %36 : vector<8x128xf32>
    %c0_21 = arith.constant 0 : index
    %c256 = arith.constant 256 : index
    %38 = vector.load %arg8[%c0_21, %c256] : memref<8x640xf32, #tpu.memory_space<vmem>>, vector<8x128xf32>
    tpu.vector_store %arg8[%c0_21, %c256], %37 {strides = array<i32>} : memref<8x640xf32, #tpu.memory_space<vmem>>, vector<8x128xf32>,
    %39 = arith.truncf %37 : vector<8x128xf32> to vector<8x128xbf16>
    %c0_22 = arith.constant 0 : index
    %c0_23 = arith.constant 0 : index
    %40 = vector.load %arg4[%c0_22, %c0_23] : memref<128x128xbf16, #tpu.memory_space<vmem>>, vector<128x128xbf16>
    %cst_24 = arith.constant dense<0.000000e+00> : vector<8x128xf32>
    %41 = tpu.matmul %39, %40, %cst_24 {dimension_numbers = #tpu.dot_dimension_numbers<[1], [0], [0], [1], [0, 0, 1, 1], [], []>} : vector<8x128xbf16>, vector<128x128xbf16>, vector<8x128xf32> -> vector<8x128xf32>
    %c0_25 = arith.constant 0 : index
    %c0_26 = arith.constant 0 : index
    %42 = vector.load %arg5[%c0_25, %c0_26] : memref<1x128xf32, #tpu.memory_space<vmem>>, vector<1x128xf32>
    %43 = vector.broadcast %42 : vector<1x128xf32> to vector<8x128xf32>
    %44 = arith.addf %41, %43 : vector<8x128xf32>
    %45 = arith.negf %44 : vector<8x128xf32>
    %46 = math.exp %45 : vector<8x128xf32>
    %cst_27 = arith.constant 1.000000e+00 : f32
    %47 = vector.broadcast %cst_27 : f32 to vector<8x128xf32>
    %48 = arith.addf %47, %46 : vector<8x128xf32>
    %49 = arith.divf %47, %48 : vector<8x128xf32>
    %50 = arith.mulf %44, %49 : vector<8x128xf32>
    %c0_28 = arith.constant 0 : index
    %c384 = arith.constant 384 : index
    %51 = vector.load %arg8[%c0_28, %c384] : memref<8x640xf32, #tpu.memory_space<vmem>>, vector<8x128xf32>
    tpu.vector_store %arg8[%c0_28, %c384], %50 {strides = array<i32>} : memref<8x640xf32, #tpu.memory_space<vmem>>, vector<8x128xf32>,
    %52 = arith.truncf %50 : vector<8x128xf32> to vector<8x128xbf16>
    %c0_29 = arith.constant 0 : index
    %c0_30 = arith.constant 0 : index
    %53 = vector.load %arg6[%c0_29, %c0_30] : memref<128x128xbf16, #tpu.memory_space<vmem>>, vector<128x128xbf16>
    %cst_31 = arith.constant dense<0.000000e+00> : vector<8x128xf32>
    %54 = tpu.matmul %52, %53, %cst_31 {dimension_numbers = #tpu.dot_dimension_numbers<[1], [0], [0], [1], [0, 0, 1, 1], [], []>} : vector<8x128xbf16>, vector<128x128xbf16>, vector<8x128xf32> -> vector<8x128xf32>
    %c0_32 = arith.constant 0 : index
    %c0_33 = arith.constant 0 : index
    %55 = vector.load %arg7[%c0_32, %c0_33] : memref<1x128xf32, #tpu.memory_space<vmem>>, vector<1x128xf32>
    %56 = vector.broadcast %55 : vector<1x128xf32> to vector<8x128xf32>
    %57 = arith.addf %54, %56 : vector<8x128xf32>
    %c0_34 = arith.constant 0 : index
    %c512 = arith.constant 512 : index
    %58 = vector.load %arg8[%c0_34, %c512] : memref<8x640xf32, #tpu.memory_space<vmem>>, vector<8x128xf32>
    tpu.vector_store %arg8[%c0_34, %c512], %57 {strides = array<i32>} : memref<8x640xf32, #tpu.memory_space<vmem>>, vector<8x128xf32>,
    return
  }
  func.func @transform_0(%arg0: i32) -> (i32, i32) {
    %c0_i32 = arith.constant 0 : i32
    %c0_i32_0 = arith.constant 0 : i32
    return %arg0, %c0_i32 : i32, i32
  }
  func.func @transform_1(%arg0: i32) -> (i32, i32) {
    %c0_i32 = arith.constant 0 : i32
    %c0_i32_0 = arith.constant 0 : i32
    %c0_i32_1 = arith.constant 0 : i32
    return %c0_i32, %c0_i32_0 : i32, i32
  }
  func.func @transform_2(%arg0: i32) -> (i32, i32) {
    %c0_i32 = arith.constant 0 : i32
    %c0_i32_0 = arith.constant 0 : i32
    %c0_i32_1 = arith.constant 0 : i32
    return %c0_i32, %c0_i32_0 : i32, i32
  }
  func.func @transform_3(%arg0: i32) -> (i32, i32) {
    %c0_i32 = arith.constant 0 : i32
    %c0_i32_0 = arith.constant 0 : i32
    %c0_i32_1 = arith.constant 0 : i32
    return %c0_i32, %c0_i32_0 : i32, i32
  }
  func.func @transform_4(%arg0: i32) -> (i32, i32) {
    %c0_i32 = arith.constant 0 : i32
    %c0_i32_0 = arith.constant 0 : i32
    %c0_i32_1 = arith.constant 0 : i32
    return %c0_i32, %c0_i32_0 : i32, i32
  }
  func.func @transform_5(%arg0: i32) -> (i32, i32) {
    %c0_i32 = arith.constant 0 : i32
    %c0_i32_0 = arith.constant 0 : i32
    %c0_i32_1 = arith.constant 0 : i32
    return %c0_i32, %c0_i32_0 : i32, i32
  }
  func.func @transform_6(%arg0: i32) -> (i32, i32) {
    %c0_i32 = arith.constant 0 : i32
    %c0_i32_0 = arith.constant 0 : i32
    %c0_i32_1 = arith.constant 0 : i32
    return %c0_i32, %c0_i32_0 : i32, i32
  }
  func.func @transform_7(%arg0: i32) -> (i32, i32) {
    %c0_i32 = arith.constant 0 : i32
    %c0_i32_0 = arith.constant 0 : i32
    return %arg0, %c0_i32 : i32, i32
  }
}

</mosaic_0001>

<bundles_post_ra>
// kernel: physics_engine_forward.1
= control target key start
LH: loop header
LB: loop body
LE: loop exit
PB: predicated region body
PF: predicated region fallthrough
CT: control target
= control target key end

     0   :  { %12 = vsyncpa [#allocation3], 0  ;;  %s1646_s27 = smov [#allocation2]   ;;  %s1647_s29 = smov 64   ;;  %s1830_s0 = inlined_call_operand.vmem [shape: bf16[8,1024], index: 0, kind: input, shape index: {}]   ;;  %s1831_s1 = inlined_call_operand.hbm [shape: bf16[1024,128], index: 1, kind: input, shape index: {}]   ;;  %s1832_s2 = inlined_call_operand.vmem [shape: f32[1,128], index: 2, kind: input, shape index: {}]   ;;  %s1833_s3 = inlined_call_operand.vmem [shape: bf16[128,128], index: 3, kind: input, shape index: {}]   ;;  %s1834_s4 = inlined_call_operand.vmem [shape: f32[1,128], index: 4, kind: input, shape index: {}]   ;;  %s1835_s5 = inlined_call_operand.vmem [shape: bf16[128,128], index: 5, kind: input, shape index: {}]   ;;  %s1836_s6 = inlined_call_operand.vmem [shape: f32[1,128], index: 6, kind: input, shape index: {}]   ;;  %s1837_s7 = inlined_call_operand.vmem [shape: f32[8,640], index: 7, kind: output, shape index: {}]  }
   0x1   :  { %s19_s26 = sshll.u32 %s1831_s1, 4  ;;  %s21_s28 = sshll.u32 %s1646_s27, 4  ;;  %s20_s26 = int_to_ptr.hbm [resolvable:$true] %s19_s26  ;;  %s22_s28 = int_to_ptr.vmem [resolvable:$true] %s21_s28 }
   0x2   :  { %s1648_s30 = smov 4  }
   0x3   :  { %27 = dma.hbm_to_vmem [thread:$0]  %s20_s26, 8192, %s22_s28, [#allocation3], %s1647_s29, %s1647_s29, %s1648_s30  }
   0x4   :  { %1644 = dma.done.wait [#allocation3], 8192  }
   0x5   :  { %1645 = vsyncadd [#allocation3], 4294959104  ;;  %v1507_v0 = vld [vmem:[#allocation2 + $0x38] sm:$0xff]  ;;  %v1506_v4 = vld [vmem:[#allocation2 + $0x30] sm:$0xff] }
   0x6   :  { %v1515_v1 = vld [vmem:[#allocation2 + $0x78] sm:$0xff]  ;;  %590 = vmatpush.bf16.msra.mxu0 %v1507_v0  ;;  %v1514_v5 = vld [vmem:[#allocation2 + $0x70] sm:$0xff]  ;;  %v1505_v8 = vld [vmem:[#allocation2 + $0x28] sm:$0xff] }
   0x7   :  { %v1523_v2 = vld [vmem:[#allocation2 + $0xb8] sm:$0xff]  ;;  %603 = vmatpush.bf16.msra.mxu1 %v1515_v1  ;;  %v1522_v6 = vld [vmem:[#allocation2 + $0xb0] sm:$0xff]  ;;  %v1513_v9 = vld [vmem:[#allocation2 + $0x68] sm:$0xff] }
   0x8   :  { %v1531_v3 = vld [vmem:[#allocation2 + $0xf8] sm:$0xff]  ;;  %616 = vmatpush.bf16.msra.mxu2 %v1523_v2  ;;  %v1530_v7 = vld [vmem:[#allocation2 + $0xf0] sm:$0xff]  ;;  %v1521_v10 = vld [vmem:[#allocation2 + $0xa8] sm:$0xff] }
   0x9   :  { %629 = vmatpush.bf16.msra.mxu3 %v1531_v3  ;;  %v1529_v11 = vld [vmem:[#allocation2 + $0xe8] sm:$0xff]  ;;  %v1504_v12 = vld [vmem:[#allocation2 + $0x20] sm:$0xff]  ;;  %v1503_v16 = vld [vmem:[#allocation2 + $0x18] sm:$0xff] }
   0xa   :  { %591 = vmatpush.bf16.msra.mxu0 %v1506_v4  ;;  %v1512_v13 = vld [vmem:[#allocation2 + $0x60] sm:$0xff]  ;;  %v1511_v17 = vld [vmem:[#allocation2 + $0x58] sm:$0xff]  ;;  %v1502_v20 = vld [vmem:[#allocation2 + $0x10] sm:$0xff] }
   0xb   :  { %604 = vmatpush.bf16.msra.mxu1 %v1514_v5  ;;  %v1520_v14 = vld [vmem:[#allocation2 + $0xa0] sm:$0xff]  ;;  %v1519_v18 = vld [vmem:[#allocation2 + $0x98] sm:$0xff]  ;;  %v1510_v21 = vld [vmem:[#allocation2 + $0x50] sm:$0xff] }
   0xc   :  { %617 = vmatpush.bf16.msra.mxu2 %v1522_v6  ;;  %v1528_v15 = vld [vmem:[#allocation2 + $0xe0] sm:$0xff]  ;;  %v1527_v19 = vld [vmem:[#allocation2 + $0xd8] sm:$0xff]  ;;  %v1518_v22 = vld [vmem:[#allocation2 + $0x90] sm:$0xff] }
   0xd   :  { %630 = vmatpush.bf16.msra.mxu3 %v1530_v7  ;;  %v1526_v23 = vld [vmem:[#allocation2 + $0xd0] sm:$0xff]  ;;  %v1501_v24 = vld [vmem:[#allocation2 + $0x8] sm:$0xff]  ;;  %v42_v29 = vld [vmem:[%s1830_s0] sm:$0xff] }
   0xe   :  { %592 = vmatpush.bf16.msra.mxu0 %v1505_v8  ;;  %v1509_v25 = vld [vmem:[#allocation2 + $0x48] sm:$0xff]  ;;  %v1500_v30 = vld [vmem:[#allocation2] sm:$0xff]  ;;  %v182_v33 = vunpack.c.l.b16 %v42_v29  ;;  %v183_v37 = vunpack.c.h.b16 %v42_v29  ;;  %v1539_v38 = vld [vmem:[#allocation2 + $0x138] sm:$0xff] }
   0xf   :  { %605 = vmatpush.bf16.msra.mxu1 %v1513_v9  ;;  %v1517_v26 = vld [vmem:[#allocation2 + $0x88] sm:$0xff]  ;;  %v1508_v31 = vld [vmem:[#allocation2 + $0x40] sm:$0xff]  ;;  %v1547_v39 = vld [vmem:[#allocation2 + $0x178] sm:$0xff] }
  0x10   :  { %618 = vmatpush.bf16.msra.mxu2 %v1521_v10  ;;  %v1525_v27 = vld [vmem:[#allocation2 + $0xc8] sm:$0xff]  ;;  %v1516_v34 = vld [vmem:[#allocation2 + $0x80] sm:$0xff]  ;;  %v1555_v40 = vld [vmem:[#allocation2 + $0x1b8] sm:$0xff]  ;;  %v190_v43 = vpack.c.b16 %v182_v33, %v182_v33  ;;  %v191_v45 = vpack.c.b16 %v183_v37, %v183_v37 }
  0x11   :  { %631 = vmatpush.bf16.msra.mxu3 %v1529_v11  ;;  %v43_v28 = vld [vmem:[%s1830_s0 + $0x8] sm:$0xff]  ;;  %v1524_v35 = vld [vmem:[#allocation2 + $0xc0] sm:$0xff]  ;;  %v1563_v41 = vld [vmem:[#allocation2 + $0x1f8] sm:$0xff] }
  0x12   :  { %593 = vmatpush.bf16.msra.mxu0 %v1504_v12  ;;  %v184_v32 = vunpack.c.l.b16 %v43_v28  ;;  %v185_v36 = vunpack.c.h.b16 %v43_v28  ;;  %v1538_v46 = vld [vmem:[#allocation2 + $0x130] sm:$0xff]  ;;  %v1537_v50 = vld [vmem:[#allocation2 + $0x128] sm:$0xff]  ;;  %v1536_v54 = vld [vmem:[#allocation2 + $0x120] sm:$0xff] }
  0x13   :  { %606 = vmatpush.bf16.msra.mxu1 %v1512_v13  ;;  %v1546_v47 = vld [vmem:[#allocation2 + $0x170] sm:$0xff]  ;;  %v1545_v51 = vld [vmem:[#allocation2 + $0x168] sm:$0xff]  ;;  %v1544_v55 = vld [vmem:[#allocation2 + $0x160] sm:$0xff] }
  0x14   :  { %619 = vmatpush.bf16.msra.mxu2 %v1520_v14  ;;  %v192_v42 = vpack.c.b16 %v184_v32, %v184_v32  ;;  %v193_v44 = vpack.c.b16 %v185_v36, %v185_v36  ;;  %v1554_v48 = vld [vmem:[#allocation2 + $0x1b0] sm:$0xff]  ;;  %v1553_v52 = vld [vmem:[#allocation2 + $0x1a8] sm:$0xff]  ;;  %v1552_v56 = vld [vmem:[#allocation2 + $0x1a0] sm:$0xff] }
  0x15   :  { %632 = vmatpush.bf16.msra.mxu3 %v1528_v15  ;;  %v1562_v49 = vld [vmem:[#allocation2 + $0x1f0] sm:$0xff]  ;;  %v1561_v53 = vld [vmem:[#allocation2 + $0x1e8] sm:$0xff]  ;;  %v1560_v57 = vld [vmem:[#allocation2 + $0x1e0] sm:$0xff] }
  0x16   :  { %594 = vmatpush.bf16.msra.mxu0 %v1503_v16  ;;  %v1535_v58 = vld [vmem:[#allocation2 + $0x118] sm:$0xff]  ;;  %v1534_v62 = vld [vmem:[#allocation2 + $0x110] sm:$0xff]  ;;  %v1533_v2 = vld [vmem:[#allocation2 + $0x108] sm:$0xff] }
  0x17   :  { %607 = vmatpush.bf16.msra.mxu1 %v1511_v17  ;;  %v1543_v59 = vld [vmem:[#allocation2 + $0x158] sm:$0xff]  ;;  %v1542_v63 = vld [vmem:[#allocation2 + $0x150] sm:$0xff]  ;;  %v1541_v3 = vld [vmem:[#allocation2 + $0x148] sm:$0xff] }
  0x18   :  { %620 = vmatpush.bf16.msra.mxu2 %v1519_v18  ;;  %v1551_v60 = vld [vmem:[#allocation2 + $0x198] sm:$0xff]  ;;  %v1550_v0 = vld [vmem:[#allocation2 + $0x190] sm:$0xff]  ;;  %v1549_v5 = vld [vmem:[#allocation2 + $0x188] sm:$0xff] }
  0x19   :  { %633 = vmatpush.bf16.msra.mxu3 %v1527_v19  ;;  %v1559_v61 = vld [vmem:[#allocation2 + $0x1d8] sm:$0xff]  ;;  %v1558_v1 = vld [vmem:[#allocation2 + $0x1d0] sm:$0xff]  ;;  %v1557_v6 = vld [vmem:[#allocation2 + $0x1c8] sm:$0xff] }
  0x1a   :  { %595 = vmatpush.bf16.msra.mxu0 %v1502_v20  ;;  %v44_v4 = vld [vmem:[%s1830_s0 + $0x10] sm:$0xff]  ;;  %v45_v7 = vld [vmem:[%s1830_s0 + $0x18] sm:$0xff]  ;;  %v1532_v10 = vld [vmem:[#allocation2 + $0x100] sm:$0xff] }
  0x1b   :  { %608 = vmatpush.bf16.msra.mxu1 %v1510_v21  ;;  %v186_v8 = vunpack.c.l.b16 %v44_v4  ;;  %v187_v9 = vunpack.c.h.b16 %v44_v4  ;;  %v1540_v11 = vld [vmem:[#allocation2 + $0x140] sm:$0xff]  ;;  %v188_v12 = vunpack.c.l.b16 %v45_v7  ;;  %v189_v13 = vunpack.c.h.b16 %v45_v7  ;;  %v1566_v37 = vld [vmem:[%s1833_s3 + $0x10] sm:$0xff]  ;;  %v1579_v4 = vld [vmem:[%s1833_s3 + $0x38] sm:$0xff] }
  0x1c   :  { %621 = vmatpush.bf16.msra.mxu2 %v1518_v22  ;;  %v1548_v14 = vld [vmem:[#allocation2 + $0x180] sm:$0xff] }
  0x1d   :  { %634 = vmatpush.bf16.msra.mxu3 %v1526_v23  ;;  %v1556_v15 = vld [vmem:[#allocation2 + $0x1c0] sm:$0xff]  ;;  %v194_v16 = vpack.c.b16 %v186_v8, %v186_v8  ;;  %v195_v17 = vpack.c.b16 %v187_v9, %v187_v9  ;;  %v196_v18 = vpack.c.b16 %v188_v12, %v188_v12  ;;  %v197_v19 = vpack.c.b16 %v189_v13, %v189_v13  ;;  %v1575_v8 = vld [vmem:[%s1833_s3 + $0x18] sm:$0xff]  ;;  %v1574_v9 = vld [vmem:[%s1833_s3 + $0x10] sm:$0xff] }
  0x1e   :  { %596 = vmatpush.bf16.msra.mxu0 %v1501_v24  ;;  %v1599_v28 = vld [vmem:[%s1832_s2] ss:$0 sm:$0xff] }
  0x1f   :  { %609 = vmatpush.bf16.msra.mxu1 %v1509_v25  ;;  %v1571_v25 = vld [vmem:[%s1833_s3 + $0x38] sm:$0xff]  ;;  %v1568_v33 = vld [vmem:[%s1833_s3 + $0x20] sm:$0xff] }
  0x20   :  { %622 = vmatpush.bf16.msra.mxu2 %v1517_v26  ;;  %v1576_v7 = vld [vmem:[%s1833_s3 + $0x20] sm:$0xff] }
  0x21   :  { %635 = vmatpush.bf16.msra.mxu3 %v1525_v27  ;;  %v1570_v27 = vld [vmem:[%s1833_s3 + $0x30] sm:$0xff]  ;;  %v1572_v12 = vld [vmem:[%s1833_s3] sm:$0xff] }
  0x22   :  { %597 = vmatpush.bf16.msra.mxu0 %v1500_v30 }
  0x23   :  { %610 = vmatpush.bf16.msra.mxu1 %v1508_v31  ;;  %v1569_v31 = vld [vmem:[%s1833_s3 + $0x28] sm:$0xff] }
  0x24   :  { %623 = vmatpush.bf16.msra.mxu2 %v1516_v34 }
  0x25   :  { %636 = vmatpush.bf16.msra.mxu3 %v1524_v35  ;;  %598 = vmatmul.bf16.vlgmr.msra.gmra.mxu0 %v190_v43  ;;  %v1567_v35 = vld [vmem:[%s1833_s3 + $0x18] sm:$0xff] }
  0x26   :  { %642 = vmatpush.bf16.msrb.mxu0 %v1539_v38  ;;  %611 = vmatmul.bf16.vlgmr.msra.gmra.mxu1 %v191_v45 }
  0x27   :  { %655 = vmatpush.bf16.msrb.mxu1 %v1547_v39  ;;  %624 = vmatmul.bf16.vlgmr.msra.gmra.mxu2 %v192_v42  ;;  %v1565_v42 = vld [vmem:[%s1833_s3 + $0x8] sm:$0xff] }
  0x28   :  { %668 = vmatpush.bf16.msrb.mxu2 %v1555_v40  ;;  %637 = vmatmul.bf16.vlgmr.msra.gmra.mxu3 %v193_v44 }
  0x29   :  { %681 = vmatpush.bf16.msrb.mxu3 %v1563_v41 }
  0x2a   :  { %643 = vmatpush.bf16.msrb.mxu0 %v1538_v46  ;;  %v1564_v46 = vld [vmem:[%s1833_s3] sm:$0xff] }
  0x2b   :  { %656 = vmatpush.bf16.msrb.mxu1 %v1546_v47 }
  0x2c   :  { %669 = vmatpush.bf16.msrb.mxu2 %v1554_v48 }
  0x2d   :  { %682 = vmatpush.bf16.msrb.mxu3 %v1562_v49 }
  0x2e   :  { %644 = vmatpush.bf16.msrb.mxu0 %v1537_v50 }
  0x2f   :  { %657 = vmatpush.bf16.msrb.mxu1 %v1545_v51 }
  0x30   :  { %670 = vmatpush.bf16.msrb.mxu2 %v1553_v52 }
  0x31   :  { %683 = vmatpush.bf16.msrb.mxu3 %v1561_v53 }
  0x32   :  { %645 = vmatpush.bf16.msrb.mxu0 %v1536_v54 }
  0x33   :  { %658 = vmatpush.bf16.msrb.mxu1 %v1544_v55 }
  0x34   :  { %671 = vmatpush.bf16.msrb.mxu2 %v1552_v56 }
  0x35   :  { %684 = vmatpush.bf16.msrb.mxu3 %v1560_v57 }
  0x36   :  { %646 = vmatpush.bf16.msrb.mxu0 %v1535_v58 }
  0x37   :  { %659 = vmatpush.bf16.msrb.mxu1 %v1543_v59 }
  0x38   :  { %672 = vmatpush.bf16.msrb.mxu2 %v1551_v60 }
  0x39   :  { %685 = vmatpush.bf16.msrb.mxu3 %v1559_v61 }
  0x3a   :  { %647 = vmatpush.bf16.msrb.mxu0 %v1534_v62 }
  0x3b   :  { %660 = vmatpush.bf16.msrb.mxu1 %v1542_v63 }
  0x3c   :  { %673 = vmatpush.bf16.msrb.mxu2 %v1550_v0 }
  0x3d   :  { %686 = vmatpush.bf16.msrb.mxu3 %v1558_v1 }
  0x3e   :  { %648 = vmatpush.bf16.msrb.mxu0 %v1533_v2 }
  0x3f   :  { %661 = vmatpush.bf16.msrb.mxu1 %v1541_v3 }
  0x40   :  { %674 = vmatpush.bf16.msrb.mxu2 %v1549_v5  ;;  %v1578_v5 = vld [vmem:[%s1833_s3 + $0x30] sm:$0xff] }
  0x41   :  { %687 = vmatpush.bf16.msrb.mxu3 %v1557_v6  ;;  %v1577_v6 = vld [vmem:[%s1833_s3 + $0x28] sm:$0xff] }
  0x42   :  { %649 = vmatpush.bf16.msrb.mxu0 %v1532_v10  ;;  %v1573_v10 = vld [vmem:[%s1833_s3 + $0x8] sm:$0xff] }
  0x43   :  { %662 = vmatpush.bf16.msrb.mxu1 %v1540_v11  ;;  %v1600_v11 = vld [vmem:[%s1834_s4] ss:$0 sm:$0xff] }
  0x44   :  { %675 = vmatpush.bf16.msrb.mxu2 %v1548_v14 }
  0x45   :  { %688 = vmatpush.bf16.msrb.mxu3 %v1556_v15  ;;  %650 = vmatmul.bf16.vlgmr.msrb.gmra.mxu0 %v194_v16 }
  0x46   :  { %663 = vmatmul.bf16.vlgmr.msrb.gmra.mxu1 %v195_v17  ;;  %784 = vmatpush.bf16.msra.mxu0 %v1571_v25 }
  0x47   :  { %676 = vmatmul.bf16.vlgmr.msrb.gmra.mxu2 %v196_v18  ;;  %887 = vmatpush.bf16.msra.mxu1 %v1579_v4 }
  0x48   :  { %689 = vmatmul.bf16.vlgmr.msrb.gmra.mxu3 %v197_v19 }
  0x4a   :  { %785 = vmatpush.bf16.msra.mxu0 %v1570_v27 }
  0x4b   :  { %888 = vmatpush.bf16.msra.mxu1 %v1578_v5 }
  0x4e   :  { %786 = vmatpush.bf16.msra.mxu0 %v1569_v31  ;;  %v1587_v31 = vld [vmem:[%s1833_s3 + $0x38] sm:$0xff] }
  0x4f   :  { %889 = vmatpush.bf16.msra.mxu1 %v1577_v6  ;;  %990 = vmatpush.bf16.msra.mxu2 %v1587_v31 }
  0x52   :  { %787 = vmatpush.bf16.msra.mxu0 %v1568_v33  ;;  %v1585_v33 = vld [vmem:[%s1833_s3 + $0x28] sm:$0xff] }
  0x53   :  { %890 = vmatpush.bf16.msra.mxu1 %v1576_v7 }
  0x56   :  { %788 = vmatpush.bf16.msra.mxu0 %v1567_v35  ;;  %v1583_v35 = vld [vmem:[%s1833_s3 + $0x18] sm:$0xff] }
  0x57   :  { %891 = vmatpush.bf16.msra.mxu1 %v1575_v8 }
  0x5a   :  { %789 = vmatpush.bf16.msra.mxu0 %v1566_v37  ;;  %v1581_v37 = vld [vmem:[%s1833_s3 + $0x8] sm:$0xff] }
  0x5b   :  { %892 = vmatpush.bf16.msra.mxu1 %v1574_v9 }
  0x5e   :  { %790 = vmatpush.bf16.msra.mxu0 %v1565_v42 }
  0x5f   :  { %893 = vmatpush.bf16.msra.mxu1 %v1573_v10 }
  0x62   :  { %791 = vmatpush.bf16.msra.mxu0 %v1564_v46 }
  0x63   :  { %894 = vmatpush.bf16.msra.mxu1 %v1572_v12 }
  0xa2   :  { %v599_v20 = vpop.f32.mrf.mxu0 }
  0xa3   :  { %v612_v21 = vpop.f32.mrf.mxu1  ;;  %v600_v32 = vadd.f32 %v1599_v28, %v599_v20 }
  0xa5   :  { %v613_v34 = vadd.f32 %v612_v21, %v600_v32  ;;  %v1586_v32 = vld [vmem:[%s1833_s3 + $0x30] sm:$0xff] }
  0xa6   :  { %991 = vmatpush.bf16.msra.mxu2 %v1586_v32 }
  0xaa   :  { %v625_v22 = vpop.f32.mrf.mxu2  ;;  %v601_v24 = vpop.f32.mrf.mxu0  ;;  %992 = vmatpush.bf16.msra.mxu2 %v1585_v33 }
  0xab   :  { %v638_v23 = vpop.f32.mrf.mxu3  ;;  %v614_v26 = vpop.f32.mrf.mxu1  ;;  %v626_v36 = vadd.f32 %v625_v22, %v613_v34  ;;  %v1584_v34 = vld [vmem:[%s1833_s3 + $0x20] sm:$0xff] }
  0xad   :  { %v639_v38 = vadd.f32 %v638_v23, %v626_v36  ;;  %v1582_v36 = vld [vmem:[%s1833_s3 + $0x10] sm:$0xff] }
  0xae   :  { %993 = vmatpush.bf16.msra.mxu2 %v1584_v34 }
  0xb2   :  { %v627_v29 = vpop.f32.mrf.mxu2  ;;  %994 = vmatpush.bf16.msra.mxu2 %v1583_v35 }
  0xb3   :  { %v640_v30 = vpop.f32.mrf.mxu3 }
  0xb6   :  { %995 = vmatpush.bf16.msra.mxu2 %v1582_v36 }
  0xba   :  { %996 = vmatpush.bf16.msra.mxu2 %v1581_v37 }
  0xc2   :  { %v651_v39 = vpop.f32.mrf.mxu0 }
  0xc3   :  { %v664_v40 = vpop.f32.mrf.mxu1  ;;  %v652_v41 = vadd.f32 %v651_v39, %v639_v38  ;;  %v1601_v38 = vld [vmem:[%s1834_s4] ss:$0 sm:$0xff] }
  0xc4   :  { %v1580_v39 = vld [vmem:[%s1833_s3] sm:$0xff] }
  0xc5   :  { %v665_v43 = vadd.f32 %v664_v40, %v652_v41  ;;  %997 = vmatpush.bf16.msra.mxu2 %v1580_v39 }
  0xca   :  { %v677_v44 = vpop.f32.mrf.mxu2  ;;  %v653_v48 = vpop.f32.mrf.mxu0 }
  0xcb   :  { %v690_v45 = vpop.f32.mrf.mxu3  ;;  %v678_v47 = vadd.f32 %v677_v44, %v665_v43  ;;  %v666_v49 = vpop.f32.mrf.mxu1 }
  0xcd   :  { %v691_v50 = vadd.f32 %v690_v45, %v678_v47 }
  0xcf   :  { %v1368_v51 = vmul.f32 -1.442695, %v691_v50 }
  0xd1   :  { %1604 = vpow2.f32 %v1368_v51 }
  0xd2   :  { %v679_v52 = vpop.f32.mrf.mxu2 }
  0xd3   :  { %v692_v53 = vpop.f32.mrf.mxu3 }
  0xd7   :  { %v1605_v54 = vpop.eup %1604 }
  0xd8   :  { %v697_v55 = vadd.f32 1.0, %v1605_v54 }
  0xda   :  { %1606 = vrcp.f32 %v697_v55  ;;  %v709_v59 = vand.u32 2147483648, %v697_v55  ;;  %v707_v61 = vand.u32 2147483647, %v697_v55  ;;  %vm703_vm1 = vweird.f32 %v697_v55 }
  0xdc   :  { %v710_v63 = vor.u32 1.1754944e-38, %v709_v59  ;;  %vm708_vm3 = vcmp.eq.f32.partialorder %v707_v61, 8.507059e+37  ;;  %v1594_v59 = vld [vmem:[%s1835_s5 + $0x30] sm:$0xff]  ;;  %v1592_v61 = vld [vmem:[%s1835_s5 + $0x20] sm:$0xff] }
  0xe0   :  { %v1607_v56 = vpop.eup %1606 }
  0xe1   :  { %v699_v57 = vmul.f32 %v1607_v56, %v697_v55  ;;  %vm704_vm0 = vweird.f32 %v1607_v56 }
  0xe2   :  { %vm705_vm2 = vmor %vm703_vm1, %vm704_vm0 }
  0xe3   :  { %v700_v58 = vsub.f32 1.0, %v699_v57 }
  0xe5   :  { %v701_v60 = vmul.f32 %v1607_v56, %v700_v58  ;;  %v1595_v58 = vld [vmem:[%s1835_s5 + $0x38] sm:$0xff] }
  0xe6   :  { %1093 = vmatpush.bf16.msra.mxu3 %v1595_v58 }
  0xe7   :  { %v702_v62 = vadd.f32 %v1607_v56, %v701_v60  ;;  %v1593_v60 = vld [vmem:[%s1835_s5 + $0x28] sm:$0xff] }
  0xe9   :  { %v706_v0 = vsel %vm705_vm2, %v1607_v56, %v702_v62  ;;  %v1591_v62 = vld [vmem:[%s1835_s5 + $0x18] sm:$0xff] }
  0xea   :  { %v711_v1 = vsel %vm708_vm3, %v710_v63, %v706_v0  ;;  %1094 = vmatpush.bf16.msra.mxu3 %v1594_v59  ;;  %v1590_v63 = vld [vmem:[%s1835_s5 + $0x10] sm:$0xff]  ;;  %v1589_v0 = vld [vmem:[%s1835_s5 + $0x8] sm:$0xff] }
  0xeb   :  { %v713_v2 = vmul.f32 %v711_v1, %v691_v50  ;;  %v1602_v1 = vld [vmem:[%s1834_s4] ss:$0 sm:$0xff] }
  0xed   :  { %714 = vst [vmem:[%s1837_s7] sm:$0xff] %v713_v2  ;;  %v715_v3 = vpack.c.bf16 %v713_v2, %v713_v2  ;;  %v1588_v2 = vld [vmem:[%s1835_s5] sm:$0xff] }
  0xee   :  { %1095 = vmatpush.bf16.msra.mxu3 %v1593_v60 }
  0xef   :  { %792 = vmatmul.bf16.vlgmr.msra.gmra.mxu0 %v715_v3 }
  0xf2   :  { %1096 = vmatpush.bf16.msra.mxu3 %v1592_v61 }
  0xf6   :  { %1097 = vmatpush.bf16.msra.mxu3 %v1591_v62 }
  0xfa   :  { %1098 = vmatpush.bf16.msra.mxu3 %v1590_v63 }
  0xfe   :  { %1099 = vmatpush.bf16.msra.mxu3 %v1589_v0 }
 0x102   :  { %1100 = vmatpush.bf16.msra.mxu3 %v1588_v2 }
 0x16c   :  { %v793_v13 = vpop.f32.mrf.mxu0 }
 0x16d   :  { %v794_v14 = vadd.f32 %v1600_v11, %v793_v13 }
 0x16f   :  { %v1401_v15 = vmul.f32 -1.442695, %v794_v14 }
 0x171   :  { %1608 = vpow2.f32 %v1401_v15 }
 0x174   :  { %v795_v16 = vpop.f32.mrf.mxu0 }
 0x177   :  { %v1609_v17 = vpop.eup %1608 }
 0x178   :  { %v800_v18 = vadd.f32 1.0, %v1609_v17 }
 0x17a   :  { %1610 = vrcp.f32 %v800_v18  ;;  %v812_v22 = vand.u32 2147483648, %v800_v18  ;;  %v810_v24 = vand.u32 2147483647, %v800_v18  ;;  %vm806_vm5 = vweird.f32 %v800_v18 }
 0x17c   :  { %v813_v26 = vor.u32 1.1754944e-38, %v812_v22  ;;  %vm811_vm7 = vcmp.eq.f32.partialorder %v810_v24, 8.507059e+37 }
 0x180   :  { %v1611_v19 = vpop.eup %1610 }
 0x181   :  { %v802_v20 = vmul.f32 %v1611_v19, %v800_v18  ;;  %vm807_vm4 = vweird.f32 %v1611_v19 }
 0x182   :  { %vm808_vm6 = vmor %vm806_vm5, %vm807_vm4 }
 0x183   :  { %v803_v21 = vsub.f32 1.0, %v802_v20 }
 0x185   :  { %v804_v23 = vmul.f32 %v1611_v19, %v803_v21  ;;  %v1603_v21 = vld [vmem:[%s1836_s6] ss:$0 sm:$0xff] }
 0x187   :  { %v805_v25 = vadd.f32 %v1611_v19, %v804_v23 }
 0x189   :  { %v809_v27 = vsel %vm808_vm6, %v1611_v19, %v805_v25 }
 0x18a   :  { %v814_v28 = vsel %vm811_vm7, %v813_v26, %v809_v27 }
 0x18b   :  { %v816_v29 = vmul.f32 %v814_v28, %v794_v14 }
 0x18d   :  { %817 = vst [vmem:[%s1837_s7 + $0x8] sm:$0xff] %v816_v29  ;;  %v818_v30 = vpack.c.bf16 %v816_v29, %v816_v29 }
 0x18f   :  { %895 = vmatmul.bf16.vlgmr.msra.gmra.mxu1 %v818_v30 }
 0x20c   :  { %v896_v40 = vpop.f32.mrf.mxu1 }
 0x20d   :  { %v897_v41 = vadd.f32 %v1601_v38, %v896_v40 }
 0x20f   :  { %v1434_v42 = vmul.f32 -1.442695, %v897_v41 }
 0x211   :  { %1612 = vpow2.f32 %v1434_v42 }
 0x214   :  { %v898_v43 = vpop.f32.mrf.mxu1 }
 0x217   :  { %v1613_v44 = vpop.eup %1612 }
 0x218   :  { %v903_v45 = vadd.f32 1.0, %v1613_v44 }
 0x21a   :  { %1614 = vrcp.f32 %v903_v45  ;;  %v915_v49 = vand.u32 2147483648, %v903_v45  ;;  %v913_v51 = vand.u32 2147483647, %v903_v45  ;;  %vm909_vm9 = vweird.f32 %v903_v45 }
 0x21c   :  { %v916_v53 = vor.u32 1.1754944e-38, %v915_v49  ;;  %vm914_vm11 = vcmp.eq.f32.partialorder %v913_v51, 8.507059e+37 }
 0x220   :  { %v1615_v46 = vpop.eup %1614 }
 0x221   :  { %v905_v47 = vmul.f32 %v1615_v46, %v903_v45  ;;  %vm910_vm8 = vweird.f32 %v1615_v46 }
 0x222   :  { %vm911_vm10 = vmor %vm909_vm9, %vm910_vm8 }
 0x223   :  { %v906_v48 = vsub.f32 1.0, %v905_v47 }
 0x225   :  { %v907_v50 = vmul.f32 %v1615_v46, %v906_v48 }
 0x227   :  { %v908_v52 = vadd.f32 %v1615_v46, %v907_v50 }
 0x229   :  { %v912_v54 = vsel %vm911_vm10, %v1615_v46, %v908_v52 }
 0x22a   :  { %v917_v55 = vsel %vm914_vm11, %v916_v53, %v912_v54 }
 0x22b   :  { %v919_v56 = vmul.f32 %v917_v55, %v897_v41 }
 0x22d   :  { %920 = vst [vmem:[%s1837_s7 + $0x10] sm:$0xff] %v919_v56  ;;  %v921_v57 = vpack.c.bf16 %v919_v56, %v919_v56 }
 0x22f   :  { %998 = vmatmul.bf16.vlgmr.msra.gmra.mxu2 %v921_v57 }
 0x2b2   :  { %v999_v3 = vpop.f32.mrf.mxu2 }
 0x2b3   :  { %v1000_v4 = vadd.f32 %v1602_v1, %v999_v3 }
 0x2b5   :  { %v1467_v5 = vmul.f32 -1.442695, %v1000_v4 }
 0x2b7   :  { %1616 = vpow2.f32 %v1467_v5 }
 0x2ba   :  { %v1001_v6 = vpop.f32.mrf.mxu2 }
 0x2bd   :  { %v1617_v7 = vpop.eup %1616 }
 0x2be   :  { %v1006_v8 = vadd.f32 1.0, %v1617_v7 }
 0x2c0   :  { %1618 = vrcp.f32 %v1006_v8  ;;  %v1018_v12 = vand.u32 2147483648, %v1006_v8  ;;  %v1016_v14 = vand.u32 2147483647, %v1006_v8  ;;  %vm1012_vm13 = vweird.f32 %v1006_v8 }
 0x2c2   :  { %v1019_v16 = vor.u32 1.1754944e-38, %v1018_v12  ;;  %vm1017_vm15 = vcmp.eq.f32.partialorder %v1016_v14, 8.507059e+37 }
 0x2c6   :  { %v1619_v9 = vpop.eup %1618 }
 0x2c7   :  { %v1008_v10 = vmul.f32 %v1619_v9, %v1006_v8  ;;  %vm1013_vm12 = vweird.f32 %v1619_v9 }
 0x2c8   :  { %vm1014_vm14 = vmor %vm1012_vm13, %vm1013_vm12 }
 0x2c9   :  { %v1009_v11 = vsub.f32 1.0, %v1008_v10 }
 0x2cb   :  { %v1010_v13 = vmul.f32 %v1619_v9, %v1009_v11 }
 0x2cd   :  { %v1011_v15 = vadd.f32 %v1619_v9, %v1010_v13 }
 0x2cf   :  { %v1015_v17 = vsel %vm1014_vm14, %v1619_v9, %v1011_v15 }
 0x2d0   :  { %v1020_v18 = vsel %vm1017_vm15, %v1019_v16, %v1015_v17 }
 0x2d1   :  { %v1022_v19 = vmul.f32 %v1020_v18, %v1000_v4 }
 0x2d3   :  { %1023 = vst [vmem:[%s1837_s7 + $0x18] sm:$0xff] %v1022_v19  ;;  %v1024_v20 = vpack.c.bf16 %v1022_v19, %v1022_v19 }
 0x2d5   :  { %1101 = vmatmul.bf16.vlgmr.msra.gmra.mxu3 %v1024_v20 }
 0x358   :  { %v1102_v22 = vpop.f32.mrf.mxu3 }
 0x359   :  { %v1103_v23 = vadd.f32 %v1603_v21, %v1102_v22 }
 0x35b   :  { %1106 = vst [vmem:[%s1837_s7 + $0x20] sm:$0xff] %v1103_v23 }
 0x360   :  { %v1104_v24 = vpop.f32.mrf.mxu3 }
 0x361   :  { %1111 = vsyncpa [#allocation3], 1 }

</bundles_post_ra>
